<compile_context>
chip_gen: v7x
topology: tpu7x:2x2x1
jax: 0.10.0
libtpu: 0.0.40
codegen_flags: <defaults>
</compile_context>

<pallas_src>
import jax
import jax.numpy as jnp
from jax.experimental import pallas as pl
from jax.experimental.pallas import tpu as pltpu


def inference_layer_kernel(x_ref, w1_ref, b1_ref, w2_ref, b2_ref,
                           gamma_ref, beta_ref, wh_ref, bh_ref,
                           d_out_ref, head_ref):
    # f32 copy of the input tile (needed in f32 for the residual add)
    x = x_ref[...].astype(jnp.float32)

    # --- MLP: Linear -> ReLU -> Linear -> LayerNorm -> ReLU ---
    # MXU operands in bf16, accumulate in f32.
    h = jnp.dot(x.astype(jnp.bfloat16), w1_ref[...],
                preferred_element_type=jnp.float32) + b1_ref[...]
    h = jnp.maximum(h, 0.0)
    h = jnp.dot(h.astype(jnp.bfloat16), w2_ref[...],
                preferred_element_type=jnp.float32) + b2_ref[...]

    # LayerNorm over last dim (biased variance, eps=1e-5, like torch.nn.LayerNorm)
    # Keep all VPU/EUP math in f32.
    mu = jnp.mean(h, axis=-1, keepdims=True)
    var = jnp.mean((h - mu) ** 2, axis=-1, keepdims=True)
    h = (h - mu) * jax.lax.rsqrt(var + 1e-5)
    h = h * gamma_ref[...] + beta_ref[...]
    h = jnp.maximum(h, 0.0)

    # residual (in_dim == out_dim, as in the reference module)
    d = h + x
    d_out_ref[...] = d.astype(d_out_ref.dtype)

    # --- fused posterior heads: one matmul, one lane-dense output slab ---
    # wh = [wm | wv] (out_dim, 2*z_dim); softplus only on the var half.
    hv = jnp.dot(d.astype(jnp.bfloat16), wh_ref[...],
                 preferred_element_type=jnp.float32) + bh_ref[...]
    two_z = hv.shape[-1]
    col = jax.lax.broadcasted_iota(jnp.int32, hv.shape, 1)
    # PyTorch softplus with threshold=20 (overflow-safe clamp inside exp)
    sp = jnp.where(hv > 20.0, hv, jnp.log1p(jnp.exp(jnp.minimum(hv, 20.0))))
    head_ref[...] = jnp.where(col >= (two_z // 2), sp, hv).astype(head_ref.dtype)


def _pick_row_tile(rows):
    """Row-tile size: big enough to pipeline, >=2 tiles so v7x megacore engages."""
    if rows >= 1024:
        return 512
    if rows >= 16:
        return max(8, (rows // 2) & ~7)   # at least 2 row tiles, multiple of 8
    return 8


def inference_layer(x, params):
    """x: (B, T, in_dim) -> (d, z_post_mean, z_post_var)."""
    B, T, in_dim = x.shape
    rows = B * T
    out_dim = params["gamma"].shape[-1]
    z_dim = params["wm"].shape[-1]

    x2 = x.reshape(rows, in_dim)

    # Row tiling (pipelined grid; pad rows up to a multiple of TM).
    TM = _pick_row_tile(rows)
    rows_p = pl.cdiv(rows, TM) * TM
    if rows_p != rows:
        x2 = jnp.pad(x2, ((0, rows_p - rows), (0, 0)))
    grid = (rows_p // TM,)

    # bf16 weights for the MXU; biases / LN affine stay f32.
    w1 = params["w1"].astype(jnp.bfloat16)
    w2 = params["w2"].astype(jnp.bfloat16)
    wh = jnp.concatenate([params["wm"], params["wv"]], axis=1).astype(jnp.bfloat16)
    bh = jnp.concatenate([params["bm"], params["bv"]], axis=1).astype(jnp.float32)

    def const_spec(shape):
        # weights/biases: same block every grid step -> resident, no re-DMA
        return pl.BlockSpec(shape, lambda i: (0, 0))

    def row_spec(fdim):
        return pl.BlockSpec((TM, fdim), lambda i: (i, 0))

    d_out, head = pl.pallas_call(
        inference_layer_kernel,
        out_shape=(
            jax.ShapeDtypeStruct((rows_p, out_dim), x.dtype),
            jax.ShapeDtypeStruct((rows_p, 2 * z_dim), x.dtype),
        ),
        grid=grid,
        in_specs=[
            row_spec(in_dim),
            const_spec(w1.shape), const_spec(params["b1"].shape),
            const_spec(w2.shape), const_spec(params["b2"].shape),
            const_spec(params["gamma"].shape), const_spec(params["beta"].shape),
            const_spec(wh.shape), const_spec(bh.shape),
        ],
        out_specs=(row_spec(out_dim), row_spec(2 * z_dim)),
        compiler_params=pltpu.CompilerParams(
            dimension_semantics=("parallel",),
            # sized so double-buffered tiles + weights fit v7x's 64 MiB VMEM
            vmem_limit_bytes=48 * 1024 * 1024,
        ),
    )(
        x2,
        w1, params["b1"], w2, params["b2"],
        params["gamma"], params["beta"],
        wh, bh,
    )

    d_out = d_out[:rows]
    z_mean = head[:rows, :z_dim]
    z_var = head[:rows, z_dim:]
    return (d_out.reshape(B, T, out_dim),
            z_mean.reshape(B, T, z_dim),
            z_var.reshape(B, T, z_dim))


def init_params(key, in_dim, latent_dim, out_dim, z_dim):
    """Deterministic synthetic init (PyTorch Linear-style uniform +/- 1/sqrt(fan_in))."""
    ks = jax.random.split(key, 8)
    hid = latent_dim * 2

    def lin(kw, kb, fan_in, fan_out):
        bound = 1.0 / jnp.sqrt(fan_in)
        w = jax.random.uniform(kw, (fan_in, fan_out), jnp.float32, -bound, bound)
        b = jax.random.uniform(kb, (1, fan_out), jnp.float32, -bound, bound)
        return w, b

    w1, b1 = lin(ks[0], ks[1], in_dim, hid)
    w2, b2 = lin(ks[2], ks[3], hid, out_dim)
    wm, bm = lin(ks[4], ks[5], out_dim, z_dim)
    wv, bv = lin(ks[6], ks[7], out_dim, z_dim)
    return dict(
        w1=w1, b1=b1, w2=w2, b2=b2,
        gamma=jnp.ones((1, out_dim), jnp.float32),
        beta=jnp.zeros((1, out_dim), jnp.float32),
        wm=wm, bm=bm, wv=wv, bv=bv,
    )


def reference_forward(x, p):
    """Pure-JAX reference matching the PyTorch forward (bf16 MXU operands,
    f32 accumulation — same numerics as the kernel)."""
    def mm(a, w):
        return jnp.dot(a.astype(jnp.bfloat16), w.astype(jnp.bfloat16),
                       preferred_element_type=jnp.float32)

    h = jnp.maximum(mm(x, p["w1"]) + p["b1"], 0.0)
    h = mm(h, p["w2"]) + p["b2"]
    mu = jnp.mean(h, axis=-1, keepdims=True)
    var = jnp.mean((h - mu) ** 2, axis=-1, keepdims=True)
    h = (h - mu) / jnp.sqrt(var + 1e-5) * p["gamma"] + p["beta"]
    h = jnp.maximum(h, 0.0)
    d = h + x
    zm = mm(d, p["wm"]) + p["bm"]
    zv_pre = mm(d, p["wv"]) + p["bv"]
    zv = jnp.where(zv_pre > 20.0, zv_pre,
                   jnp.log1p(jnp.exp(jnp.minimum(zv_pre, 20.0))))
    return d, zm, zv


if __name__ == "__main__":
    # Small shapes consistent with the module (in_dim == out_dim for the residual).
    B, T = 2, 8
    in_dim = out_dim = 8
    latent_dim = 16      # hidden = 2 * latent_dim = 32
    z_dim = 32

    key = jax.random.PRNGKey(0)
    kx, kp = jax.random.split(key)
    x = jax.random.normal(kx, (B, T, in_dim), jnp.float32)
    params = init_params(kp, in_dim, latent_dim, out_dim, z_dim)

    d_out, z_mean, z_var = inference_layer(x, params)
    jax.block_until_ready((d_out, z_mean, z_var))

    # correctness check against a pure-JAX reference with matching numerics
    d_ref, m_ref, v_ref = reference_forward(x, params)
    assert jnp.allclose(d_out, d_ref, atol=2e-3, rtol=2e-3)
    assert jnp.allclose(z_mean, m_ref, atol=2e-3, rtol=2e-3)
    assert jnp.allclose(z_var, v_ref, atol=2e-3, rtol=2e-3)

    print("KERNEL_OK")
</pallas_src>

<mosaic_0001>
module attributes {stable_mosaic.version = 11 : i64} {
  func.func @inference_layer_kernel(%arg0: i32, %arg1: memref<8x8xf32, #tpu.memory_space<vmem>>, %arg2: memref<8x32xbf16, #tpu.memory_space<vmem>>, %arg3: memref<1x32xf32, #tpu.memory_space<vmem>>, %arg4: memref<32x8xbf16, #tpu.memory_space<vmem>>, %arg5: memref<1x8xf32, #tpu.memory_space<vmem>>, %arg6: memref<1x8xf32, #tpu.memory_space<vmem>>, %arg7: memref<1x8xf32, #tpu.memory_space<vmem>>, %arg8: memref<8x64xbf16, #tpu.memory_space<vmem>>, %arg9: memref<1x64xf32, #tpu.memory_space<vmem>>, %arg10: memref<8x8xf32, #tpu.memory_space<vmem>>, %arg11: memref<8x64xf32, #tpu.memory_space<vmem>>) attributes {dimension_semantics = [#tpu.dimension_semantics<parallel>], iteration_bounds = array<i64: 2>, scalar_prefetch = 0 : i64, scratch_operands = 0 : i64, tpu.core_type = #tpu.core_type<tc>, window_params = [{transform_indices = @transform_0, window_bounds = array<i64: 8, 8>}, {pipeline_mode = #tpu.pipeline_mode<synchronous>, transform_indices = @transform_1, window_bounds = array<i64: 8, 32>}, {pipeline_mode = #tpu.pipeline_mode<synchronous>, transform_indices = @transform_2, window_bounds = array<i64: 1, 32>}, {pipeline_mode = #tpu.pipeline_mode<synchronous>, transform_indices = @transform_3, window_bounds = array<i64: 32, 8>}, {pipeline_mode = #tpu.pipeline_mode<synchronous>, transform_indices = @transform_4, window_bounds = array<i64: 1, 8>}, {pipeline_mode = #tpu.pipeline_mode<synchronous>, transform_indices = @transform_5, window_bounds = array<i64: 1, 8>}, {pipeline_mode = #tpu.pipeline_mode<synchronous>, transform_indices = @transform_6, window_bounds = array<i64: 1, 8>}, {pipeline_mode = #tpu.pipeline_mode<synchronous>, transform_indices = @transform_7, window_bounds = array<i64: 8, 64>}, {pipeline_mode = #tpu.pipeline_mode<synchronous>, transform_indices = @transform_8, window_bounds = array<i64: 1, 64>}, {transform_indices = @transform_9, window_bounds = array<i64: 8, 8>}, {transform_indices = @transform_10, window_bounds = array<i64: 8, 64>}]} {
    %c0 = arith.constant 0 : index
    %c0_0 = arith.constant 0 : index
    %0 = vector.load %arg1[%c0, %c0_0] : memref<8x8xf32, #tpu.memory_space<vmem>>, vector<8x8xf32>
    %1 = arith.truncf %0 : vector<8x8xf32> to vector<8x8xbf16>
    %c0_1 = arith.constant 0 : index
    %c0_2 = arith.constant 0 : index
    %2 = vector.load %arg2[%c0_1, %c0_2] : memref<8x32xbf16, #tpu.memory_space<vmem>>, vector<8x32xbf16>
    %cst = arith.constant dense<0.000000e+00> : vector<8x32xf32>
    %3 = tpu.matmul %1, %2, %cst {dimension_numbers = #tpu.dot_dimension_numbers<[1], [0], [0], [1], [0, 0, 1, 1], [], []>} : vector<8x8xbf16>, vector<8x32xbf16>, vector<8x32xf32> -> vector<8x32xf32>
    %c0_3 = arith.constant 0 : index
    %c0_4 = arith.constant 0 : index
    %4 = vector.load %arg3[%c0_3, %c0_4] : memref<1x32xf32, #tpu.memory_space<vmem>>, vector<1x32xf32>
    %5 = vector.broadcast %4 : vector<1x32xf32> to vector<8x32xf32>
    %6 = arith.addf %3, %5 : vector<8x32xf32>
    %cst_5 = arith.constant 0.000000e+00 : f32
    %7 = vector.broadcast %cst_5 : f32 to vector<8x32xf32>
    %8 = arith.maximumf %6, %7 : vector<8x32xf32>
    %9 = arith.truncf %8 : vector<8x32xf32> to vector<8x32xbf16>
    %c0_6 = arith.constant 0 : index
    %c0_7 = arith.constant 0 : index
    %10 = vector.load %arg4[%c0_6, %c0_7] : memref<32x8xbf16, #tpu.memory_space<vmem>>, vector<32x8xbf16>
    %cst_8 = arith.constant dense<0.000000e+00> : vector<8x8xf32>
    %11 = tpu.matmul %9, %10, %cst_8 {dimension_numbers = #tpu.dot_dimension_numbers<[1], [0], [0], [1], [0, 0, 1, 1], [], []>} : vector<8x32xbf16>, vector<32x8xbf16>, vector<8x8xf32> -> vector<8x8xf32>
    %c0_9 = arith.constant 0 : index
    %c0_10 = arith.constant 0 : index
    %12 = vector.load %arg5[%c0_9, %c0_10] : memref<1x8xf32, #tpu.memory_space<vmem>>, vector<1x8xf32>
    %13 = vector.broadcast %12 : vector<1x8xf32> to vector<8x8xf32>
    %14 = arith.addf %11, %13 : vector<8x8xf32>
    %cst_11 = arith.constant dense<0.000000e+00> : vector<8xf32>
    %15 = vector.multi_reduction <add>, %14, %cst_11 [1] : vector<8x8xf32> to vector<8xf32>
    %16 = vector.shape_cast %15 : vector<8xf32> to vector<8x1xf32>
    %cst_12 = arith.constant 8.000000e+00 : f32
    %17 = vector.broadcast %cst_12 : f32 to vector<8x1xf32>
    %18 = arith.divf %16, %17 : vector<8x1xf32>
    %19 = vector.broadcast %18 : vector<8x1xf32> to vector<8x8xf32>
    %20 = arith.subf %14, %19 : vector<8x8xf32>
    %21 = arith.mulf %20, %20 : vector<8x8xf32>
    %cst_13 = arith.constant dense<0.000000e+00> : vector<8xf32>
    %22 = vector.multi_reduction <add>, %21, %cst_13 [1] : vector<8x8xf32> to vector<8xf32>
    %23 = vector.shape_cast %22 : vector<8xf32> to vector<8x1xf32>
    %cst_14 = arith.constant 8.000000e+00 : f32
    %24 = vector.broadcast %cst_14 : f32 to vector<8x1xf32>
    %25 = arith.divf %23, %24 : vector<8x1xf32>
    %26 = vector.broadcast %18 : vector<8x1xf32> to vector<8x8xf32>
    %27 = arith.subf %14, %26 : vector<8x8xf32>
    %cst_15 = arith.constant 9.99999974E-6 : f32
    %28 = vector.broadcast %cst_15 : f32 to vector<8x1xf32>
    %29 = arith.addf %25, %28 : vector<8x1xf32>
    %30 = math.rsqrt %29 : vector<8x1xf32>
    %31 = vector.broadcast %30 : vector<8x1xf32> to vector<8x8xf32>
    %32 = arith.mulf %27, %31 : vector<8x8xf32>
    %c0_16 = arith.constant 0 : index
    %c0_17 = arith.constant 0 : index
    %33 = vector.load %arg6[%c0_16, %c0_17] : memref<1x8xf32, #tpu.memory_space<vmem>>, vector<1x8xf32>
    %34 = vector.broadcast %33 : vector<1x8xf32> to vector<8x8xf32>
    %35 = arith.mulf %32, %34 : vector<8x8xf32>
    %c0_18 = arith.constant 0 : index
    %c0_19 = arith.constant 0 : index
    %36 = vector.load %arg7[%c0_18, %c0_19] : memref<1x8xf32, #tpu.memory_space<vmem>>, vector<1x8xf32>
    %37 = vector.broadcast %36 : vector<1x8xf32> to vector<8x8xf32>
    %38 = arith.addf %35, %37 : vector<8x8xf32>
    %cst_20 = arith.constant 0.000000e+00 : f32
    %39 = vector.broadcast %cst_20 : f32 to vector<8x8xf32>
    %40 = arith.maximumf %38, %39 : vector<8x8xf32>
    %41 = arith.addf %40, %0 : vector<8x8xf32>
    %c0_21 = arith.constant 0 : index
    %c0_22 = arith.constant 0 : index
    %42 = vector.load %arg10[%c0_21, %c0_22] : memref<8x8xf32, #tpu.memory_space<vmem>>, vector<8x8xf32>
    tpu.vector_store %arg10[%c0_21, %c0_22], %41 {strides = array<i32>} : memref<8x8xf32, #tpu.memory_space<vmem>>, vector<8x8xf32>,
    %43 = arith.truncf %41 : vector<8x8xf32> to vector<8x8xbf16>
    %c0_23 = arith.constant 0 : index
    %c0_24 = arith.constant 0 : index
    %44 = vector.load %arg8[%c0_23, %c0_24] : memref<8x64xbf16, #tpu.memory_space<vmem>>, vector<8x64xbf16>
    %cst_25 = arith.constant dense<0.000000e+00> : vector<8x64xf32>
    %45 = tpu.matmul %43, %44, %cst_25 {dimension_numbers = #tpu.dot_dimension_numbers<[1], [0], [0], [1], [0, 0, 1, 1], [], []>} : vector<8x8xbf16>, vector<8x64xbf16>, vector<8x64xf32> -> vector<8x64xf32>
    %c0_26 = arith.constant 0 : index
    %c0_27 = arith.constant 0 : index
    %46 = vector.load %arg9[%c0_26, %c0_27] : memref<1x64xf32, #tpu.memory_space<vmem>>, vector<1x64xf32>
    %47 = vector.broadcast %46 : vector<1x64xf32> to vector<8x64xf32>
    %48 = arith.addf %45, %47 : vector<8x64xf32>
    %49 = tpu.iota {dimensions = array<i32: 1>} : vector<8x64xi32>
    %cst_28 = arith.constant 2.000000e+01 : f32
    %50 = vector.broadcast %cst_28 : f32 to vector<8x64xf32>
    %51 = arith.cmpf ogt, %48, %50 : vector<8x64xf32>
    %cst_29 = arith.constant 2.000000e+01 : f32
    %52 = vector.broadcast %cst_29 : f32 to vector<8x64xf32>
    %53 = arith.minimumf %48, %52 : vector<8x64xf32>
    %54 = math.exp %53 : vector<8x64xf32>
    %55 = math.log1p %54 : vector<8x64xf32>
    %56 = arith.select %51, %48, %55 : vector<8x64xi1>, vector<8x64xf32>
    %c32_i32 = arith.constant 32 : i32
    %57 = vector.broadcast %c32_i32 : i32 to vector<8x64xi32>
    %58 = arith.cmpi sge, %49, %57 : vector<8x64xi32>
    %59 = arith.select %58, %56, %48 : vector<8x64xi1>, vector<8x64xf32>
    %c0_30 = arith.constant 0 : index
    %c0_31 = arith.constant 0 : index
    %60 = vector.load %arg11[%c0_30, %c0_31] : memref<8x64xf32, #tpu.memory_space<vmem>>, vector<8x64xf32>
    tpu.vector_store %arg11[%c0_30, %c0_31], %59 {strides = array<i32>} : memref<8x64xf32, #tpu.memory_space<vmem>>, vector<8x64xf32>,
    return
  }
  func.func @transform_0(%arg0: i32) -> (i32, i32) {
    %c0_i32 = arith.constant 0 : i32
    %c0_i32_0 = arith.constant 0 : i32
    return %arg0, %c0_i32 : i32, i32
  }
  func.func @transform_1(%arg0: i32) -> (i32, i32) {
    %c0_i32 = arith.constant 0 : i32
    %c0_i32_0 = arith.constant 0 : i32
    %c0_i32_1 = arith.constant 0 : i32
    return %c0_i32, %c0_i32_0 : i32, i32
  }
  func.func @transform_2(%arg0: i32) -> (i32, i32) {
    %c0_i32 = arith.constant 0 : i32
    %c0_i32_0 = arith.constant 0 : i32
    %c0_i32_1 = arith.constant 0 : i32
    return %c0_i32, %c0_i32_0 : i32, i32
  }
  func.func @transform_3(%arg0: i32) -> (i32, i32) {
    %c0_i32 = arith.constant 0 : i32
    %c0_i32_0 = arith.constant 0 : i32
    %c0_i32_1 = arith.constant 0 : i32
    return %c0_i32, %c0_i32_0 : i32, i32
  }
  func.func @transform_4(%arg0: i32) -> (i32, i32) {
    %c0_i32 = arith.constant 0 : i32
    %c0_i32_0 = arith.constant 0 : i32
    %c0_i32_1 = arith.constant 0 : i32
    return %c0_i32, %c0_i32_0 : i32, i32
  }
  func.func @transform_5(%arg0: i32) -> (i32, i32) {
    %c0_i32 = arith.constant 0 : i32
    %c0_i32_0 = arith.constant 0 : i32
    %c0_i32_1 = arith.constant 0 : i32
    return %c0_i32, %c0_i32_0 : i32, i32
  }
  func.func @transform_6(%arg0: i32) -> (i32, i32) {
    %c0_i32 = arith.constant 0 : i32
    %c0_i32_0 = arith.constant 0 : i32
    %c0_i32_1 = arith.constant 0 : i32
    return %c0_i32, %c0_i32_0 : i32, i32
  }
  func.func @transform_7(%arg0: i32) -> (i32, i32) {
    %c0_i32 = arith.constant 0 : i32
    %c0_i32_0 = arith.constant 0 : i32
    %c0_i32_1 = arith.constant 0 : i32
    return %c0_i32, %c0_i32_0 : i32, i32
  }
  func.func @transform_8(%arg0: i32) -> (i32, i32) {
    %c0_i32 = arith.constant 0 : i32
    %c0_i32_0 = arith.constant 0 : i32
    %c0_i32_1 = arith.constant 0 : i32
    return %c0_i32, %c0_i32_0 : i32, i32
  }
  func.func @transform_9(%arg0: i32) -> (i32, i32) {
    %c0_i32 = arith.constant 0 : i32
    %c0_i32_0 = arith.constant 0 : i32
    return %arg0, %c0_i32 : i32, i32
  }
  func.func @transform_10(%arg0: i32) -> (i32, i32) {
    %c0_i32 = arith.constant 0 : i32
    %c0_i32_0 = arith.constant 0 : i32
    return %arg0, %c0_i32 : i32, i32
  }
}

</mosaic_0001>

<bundles_post_ra>
// kernel: tpu_custom_call.1
= control target key start
LH: loop header
LB: loop body
LE: loop exit
PB: predicated region body
PF: predicated region fallthrough
CT: control target
= control target key end

     0   :  { %16 = vsyncpa [#allocation3], 0  ;;  %s1069_s0 = inlined_call_operand.vmem [shape: f32[16,8], index: 0, kind: input, shape index: {}]   ;;  %s1070_s1 = inlined_call_operand.vmem [shape: bf16[8,32], index: 1, kind: input, shape index: {}]   ;;  %s1071_s2 = inlined_call_operand.vmem [shape: f32[1,32], index: 2, kind: input, shape index: {}]   ;;  %s1072_s3 = inlined_call_operand.vmem [shape: bf16[32,8], index: 3, kind: input, shape index: {}]   ;;  %s1073_s4 = inlined_call_operand.vmem [shape: f32[1,8], index: 4, kind: input, shape index: {}]   ;;  %s1074_s5 = inlined_call_operand.vmem [shape: f32[1,8], index: 5, kind: input, shape index: {}]   ;;  %s1075_s6 = inlined_call_operand.vmem [shape: f32[1,8], index: 6, kind: input, shape index: {}]   ;;  %s1076_s7 = inlined_call_operand.vmem [shape: bf16[8,64], index: 7, kind: input, shape index: {}]   ;;  %s1077_s8 = inlined_call_operand.vmem [shape: f32[1,64], index: 8, kind: input, shape index: {}]   ;;  %s1078_s9 = inlined_call_operand.vmem [shape: f32[16,8], index: 9, kind: output, shape index: {0}]   ;;  %s1079_s10 = inlined_call_operand.hbm [shape: f32[16,64], index: 10, kind: output, shape index: {1}]  }
   0x1   :  { %18 = vsyncpa [#allocation3 + $0x1], 0  ;;  %s925_s13 = smov 0   ;;  %s927_s14 = smov 0  }
   0x2   :  { %s929_s15 = smov 0   ;;  %s931_s16 = smov 0  }
   0x3 LB: > { %s946_s17 = sadd.s32 4294967295, %s865_s16   ;;  %s706_s18 = sadd.s32 4294967294, %s865_s16   ;;  %s865_s16 = sphi %s931_s16, %s1085_s16   ;;  %s861_s15 = sphi %s929_s15, %s1084_s15   ;;  %s857_s14 = sphi %s927_s14, %s1083_s14   ;;  %s853_s13 = sphi %s925_s13, %s1082_s13  }
   0x4   : > { %s950_s19 = sadd.s32 1, %s865_s16   ;;  %s251_s20 = sadd.s32 1, %s861_s15 }
   0x5   : > { %s248_s21 = ssub.s32 %s865_s16, %s950_s19  ;;  %p261_p0 = scmp.ne.s32.totalorder %s861_s15, %s857_s14 }
   0x6   : > { %p249_p1 = scmp.eq.s32.totalorder %s248_s21, 0  ;;  %p262_p2 = scmp.eq.s32.totalorder %s946_s17, 1 }
   0x7   : > { %p267_p3 = scmp.ne.s32.totalorder %s857_s14, %s853_s13  ;;  %p268_p4 = scmp.eq.s32.totalorder %s706_s18, 1 }
   0x8   : > { %s961_s22 = scalar_select %p249_p1, %s861_s15, %s251_s20  }
   0x9   : > { %p963_p5 = por %p262_p2, %p261_p0  ;;  %p967_p6 = por %p268_p4, %p267_p3 }
   0xa   : > { %p709_p7 = scmp.ge.s32.totalorder %s865_s16, 1  ;;  %p317_p8 = scmp.lt.s32.totalorder %s865_s16, 3 }
   0xc   : > { %p318_p9 = pnand %p709_p7, %p317_p8 }
   0xd   : > { %v369_v0 = vld [vmem:[%s1070_s1] sm:$0xf] (!%p318_p9)  ;;  %vm381_vm0 = vcmask (!%p318_p9), 1043456   ;;  %v867_v1 = vmov (!%p318_p9), 0.0   ;;  %p358_p10 = scmp.lt.s32.totalorder (!%p318_p9), %s946_s17, 1  ;;  %vm868_vm1 = vmmov (!%p318_p9), 0   ;;  %v582_v52 = vlaneseq (!%p318_p9) }
   0xe   : > { %321 = sbr.rel (%p318_p9) target bundleno = 1040 (0x410), region = 56  ;;  %734 = vmatprep.subr.bf16.mxu0 (!%p318_p9), %v867_v1  ;;  %v383_v2 = vsel (!%p318_p9), %vm381_vm0, %v369_v0, 0  ;;  %740 = vmatprep.subr.bf16.mxu1 (!%p318_p9), %v867_v1  ;;  %v528_v3 = vld [vmem:[%s1076_s7] sm:$0xf] (!%p318_p9)  ;;  %vm377_vm2 = vcmask (!%p318_p9), 64512   ;;  %v796_v8 = vld [vmem:[%s1072_s3 + $0x8] sm:$0xff] (!%p318_p9)  }
   0xf   : > { %735 = vmatpush3.bf16.msra.mxu0 (!%p318_p9), %v383_v2  ;;  %736 = vmatprep.mubr.msk.bf16.mxu0 (!%p318_p9), %vm868_vm1, %v867_v1  ;;  %v540_v5 = vsel (!%p318_p9), %vm381_vm0, %v528_v3, 0  ;;  %v795_v7 = vld [vmem:[%s1072_s3] sm:$0xff] (!%p318_p9)   ;;  %vm450_vm3 = vcmask (!%p318_p9), 261120   ;;  %v583_v54 = vand.u32 (!%p318_p9), 127, %v582_v52  ;;  %vm600_vm7 = vcmask (!%p318_p9), 523264   ;;  %s869_s11 = smov (!%p318_p9), [#allocation2]  }
  0x10   : > { %744 = vmatprep.mubr.msk.bf16.mxu1 (!%p318_p9), %vm868_vm1, %v867_v1  ;;  %748 = vmatprep.subr.bf16.mxu0 (!%p318_p9), %v867_v1  ;;  %v713_v9 = vld [vmem:[%s1071_s2] ss:$0 sm:$0xff] (!%p318_p9)  ;;  %s807_s12 = sshll.u32 (!%p318_p9), %s869_s11, 4  ;;  %s808_s12 = int_to_ptr.vmem [resolvable:$false] %s807_s12 }
  0x11   : > { %741 = vmatpush3.bf16.msra.mxu1 (!%p318_p9), %v795_v7  ;;  %v715_v17 = vld [vmem:[%s1073_s4] ss:$0 sm:$0xff] (!%p318_p9)  ;;  %vm598_vm5 = vcmp.ge.s32.totalorder (!%p318_p9), %v583_v54, 32 }
  0x12   : > { %742 = vmatprep.subr.bf16.mxu1 (!%p318_p9), %v867_v1  ;;  %v719_v33 = vld [vmem:[%s1074_s5] ss:$0 sm:$0xff] (!%p318_p9) }
  0x13   : > { %v720_v35 = vld [vmem:[%s1075_s6] ss:$0 sm:$0xff] (!%p318_p9) }
  0x14   : > { %v721_v41 = vld [vmem:[%s1077_s8] ss:$0 sm:$0xff] (!%p318_p9) }
  0x15   : > { %s979_s27 = scalar_select %p358_p10, %s946_s17, 1  ;;  %743 = vmatpush3.bf16.msra.mxu1 %v796_v8 }
  0x17   : > { %s711_s30 = sshll.u32 %s979_s27, 3  ;;  %s355_s27 = sand.u32 1, %s857_s14  }
  0x18   : > { %s361_s18 = scalar_lea.vmem %s1069_s0, %s711_s30  ;;  %s365_s29 = scalar_lea.vmem %s1078_s9, %s711_s30 }
  0x19   : > { %v367_v4 = vld [vmem:[%s361_s18] sm:$0xff]  ;;  %s710_s30 = sshll.u32 %s355_s27, 3  ;;  %s724_s18 = sshll.u32 %s946_s17, 7 }
  0x1a   : > { %v368_v6 = vpack.c.bf16 %v367_v4, %v367_v4  ;;  %s357_s20 = scalar_lea.vmem [#allocation2], %s710_s30  ;;  %s1027_s28 = scalar_lea.hbm %s1079_s10, %s724_s18 }
  0x1b   : > { %s623_s21 = sshll.u32 %s357_s20, 4  ;;  %s607_s17 = scalar_lea.sflag [#allocation3], %s355_s27  ;;  %s1029_s21 = int_to_ptr.vmem [resolvable:$true] %s623_s21 }
  0x1c   : > { %737 = vmatmul.mubr.msk.bf16.vlgmr.msra.gmra.mrb[0].mxu0 %vm377_vm2, %v368_v6  ;;  %s809_s30 = scalar_lea.vmem %s808_s12, 256  ;;  %p810_p0 = scmp.lt.s32.totalorder %s1029_s21, %s808_s12 }
  0x1d   : > { %749 = vmatpush3.bf16.msra.mxu0 %v540_v5  ;;  %750 = vmatprep.mubr.msk.bf16.mxu0 %vm868_vm1, %v867_v1 }
  0xef   : > { %v419_v10 = vpop.f32.mrb[0].mxu0 }
  0xf0   : > { %v420_v11 = vadd.f32 %v713_v9, %v419_v10  ;;  %v738_v12 = vpop.f32.mrb[1].mxu0 }
  0xf1   : > { %v422_v13 = vpop.f32.mrb[2].mxu0 }
  0xf2   : > { %v425_v14 = vmax.f32 %v420_v11, 0.0  ;;  %v739_v15 = vpop.f32.mrb[3].mxu0 }
  0xf4   : > { %v426_v16 = vpack.c.bf16 %v425_v14, %v425_v14 }
  0xf6   : > { %745 = vmatmul.mubr.msk.bf16.vlgmr.msra.gmra.mrb[0].mxu1 %vm450_vm3, %v426_v16 }
 0x1c9   : > { %v488_v18 = vpop.f32.mrb[0].mxu1 }
 0x1ca   : > { %v489_v19 = vadd.f32 %v715_v17, %v488_v18  ;;  %v746_v20 = vpop.f32.mrb[1].mxu1 }
 0x1cb   : > { %v491_v21 = vpop.f32.mrb[2].mxu1 }
 0x1cc   : > { %v747_v22 = vpop.f32.mrb[3].mxu1  ;;  %v494_v23 = vsel %vm377_vm2, %v489_v19, 0.0 }
 0x1cd   : > { %495 = vadd.xlane.f32.xlu0 %v494_v23 }
 0x25a   : > { %v496_v24 = vpop.xlane.xlu0 %495 }
 0x25b   : > { %v498_v25 = vmul.f32 0.125, %v496_v24 }
 0x25d   : > { %v499_v26 = vsub.f32 %v489_v19, %v498_v25 }
 0x25f   : > { %v500_v27 = vmul.f32 %v499_v26, %v499_v26 }
 0x261   : > { %v501_v28 = vsel %vm377_vm2, %v500_v27, 0.0 }
 0x262   : > { %502 = vadd.xlane.f32.xlu0 %v501_v28 }
 0x2ef   : > { %v503_v29 = vpop.xlane.xlu0 %502 }
 0x2f0   : > { %v504_v30 = vmul.f32 0.125, %v503_v29 }
 0x2f2   : > { %v505_v31 = vadd.f32 1e-05, %v504_v30 }
 0x2f4   : > { %797 = vrsqrt.f32 %v505_v31 }
 0x2fe   : > { %v798_v32 = vpop.eup %797 }
 0x2ff   : > { %v507_v34 = vmul.f32 %v798_v32, %v499_v26 }
 0x301   : > { %v515_v36 = vmul.f32 %v719_v33, %v507_v34 }
 0x303   : > { %v523_v37 = vadd.f32 %v720_v35, %v515_v36 }
 0x305   : > { %v524_v38 = vmax.f32 %v523_v37, 0.0 }
 0x307   : > { %v525_v39 = vadd.f32 %v524_v38, %v367_v4 }
 0x309   : > { %526 = vst.msk [vmem:[%s365_s29] sm:$0xff] %vm377_vm2, %v525_v39  ;;  %v527_v40 = vpack.c.bf16 %v525_v39, %v525_v39  ;;  %s803_s29 = scalar_lea.vmem %s1029_s21, 128 }
 0x30a   : > { %p804_p11 = scmp.ne.s32.totalorder %s1029_s21, %s803_s29  ;;  %p811_p1 = scmp.lt.s32.totalorder %s809_s30, %s803_s29 }
 0x30b   : > { %751 = vmatmul.mubr.msk.bf16.vlgmr.msra.gmra.mrb[4].mxu0 %vm377_vm2, %v527_v40 }
 0x30c   : > { %p805_p12 = pnand %p804_p11, %p963_p5  ;;  %p812_p2 = por %p811_p1, %p810_p0 }
 0x30e   : > { %p806_p13 = pneg %p805_p12 }
 0x310   : > { %p813_p3 = pnand %p812_p2, %p806_p13 }
 0x3de   : > { %v576_v42 = vpop.f32.mrb[4].mxu0 }
 0x3df   : > { %v577_v43 = vadd.f32 %v721_v41, %v576_v42  ;;  %v752_v44 = vpop.f32.mrb[5].mxu0 }
 0x3e0   : > { %v579_v45 = vpop.f32.mrb[6].mxu0 }
 0x3e1   : > { %v585_v46 = vmin.f32 %v577_v43, 20.0  ;;  %v753_v47 = vpop.f32.mrb[7].mxu0  ;;  %vm584_vm6 = vcmp.gt.f32.partialorder %v577_v43, 20.0 }
 0x3e3   : > { %v586_v48 = vmul.f32 1.442695, %v585_v46 }
 0x3e5   : > { %799 = vpow2.f32 %v586_v48 }
 0x3ef   : > { %v800_v49 = vpop.eup %799 }
 0x3f0   : > { %v588_v50 = vadd.f32 1.0, %v800_v49  ;;  %v591_v51 = vmul.f32 -0.5, %v800_v49  ;;  %v594_v55 = vand.u32 2147483647, %v800_v49 }
 0x3f2   : > { %801 = vlog2.f32 %v588_v50  ;;  %v592_v53 = vadd.f32 1.0, %v591_v51  ;;  %vm595_vm4 = vcmp.lt.f32.partialorder %v594_v55, 0.0004427343 }
 0x3f4   : > { %v593_v58 = vmul.f32 %v800_v49, %v592_v53 }
 0x3fc   : > { %v802_v56 = vpop.eup %801 }
 0x3fd   : > { %v590_v57 = vmul.f32 0.6931472, %v802_v56 }
 0x3ff   : > { %v596_v59 = vsel %vm595_vm4, %v593_v58, %v590_v57 }
 0x400   : > { %v597_v60 = vsel %vm584_vm6, %v577_v43, %v596_v59 }
 0x401   : > { %v599_v61 = vsel %vm598_vm5, %v597_v60, %v577_v43 }
 0x402   : > { %601 = vst.msk [vmem:[%s357_s20] sm:$0xff] %vm600_vm7, %v599_v61 }
 0x403   : > { %816 = shalt.err (!%p813_p3)
}
 0x404   : > { %s817_s27 = scalar_lea.hbm %s1027_s28, 128  ;;  %s821_s25 = scalar_lea.hbm %s1079_s10, 256 }
 0x405   : > { %p818_p4 = scmp.ne.s32.totalorder %s1027_s28, %s817_s27  ;;  %p822_p9 = scmp.lt.u32.totalorder %s1027_s28, %s1079_s10 }
 0x406   : > { %p823_p10 = scmp.lt.u32.totalorder %s821_s25, %s817_s27  ;;  %p825_p12 = scmp.lt.u32.totalorder %s817_s27, %s1027_s28 }
 0x407   : > { %p819_p7 = pnand %p818_p4, %p963_p5 }
 0x408   : > { %p824_p11 = por %p823_p10, %p822_p9 }
 0x409   : > { %p820_p8 = pneg %p819_p7 }
 0x40a   : > { %p826_p13 = por %p825_p12, %p824_p11 }
 0x40c   : > { %p827_p0 = pnand %p826_p13, %p820_p8 }
 0x40e   : > { %830 = shalt.err (!%p827_p0)
}
 0x40f   : > { %754 = dma.vmem_to_hbm [thread:$0]  (%p963_p5), %s1029_s21, 128, %s1027_s28, %s607_s17  }
 0x410 PF: > { %p760_p1 = scmp.ge.s32.totalorder %s865_s16, 2  ;;  %s642_s29 = sand.u32 1, %s853_s13  }
 0x411   : > { %s643_s12 = scalar_lea.sflag [#allocation3], %s642_s29 }
 0x412   : > { %p757_p2 = pnand %p760_p1, %p967_p6 }
 0x414   : > { %848 = dma.done.wait (!%p757_p2), %s643_s12, 128  }
 0x415   : > { %850 = vsyncadd (!%p757_p2), %s643_s12, 4294967168  ;;  %p21_p3 = scmp.ge.s32.totalorder %s950_s19, 4   ;;  %s1082_s13 = smov %s857_s14 }
 0x416   : > { %s1083_s14 = smov %s861_s15  ;;  %s1084_s15 = smov %s961_s22 }
 0x417   : > { %s1085_s16 = smov %s950_s19  ;;  %23 = sbr.rel (!%p21_p3) target bundleno = 3 (0x3), region = 103 }
 0x41e   :  { %648 = vsyncpa [#allocation3], 1 }
 0x41f   :  { %650 = vsyncpa [#allocation3 + $0x1], 1 }

</bundles_post_ra>
